<compile_context>
chip_gen: v7x
topology: tpu7x:2x2x1
jax: 0.10.0
libtpu: 0.0.40
codegen_flags: <defaults>
</compile_context>

<pallas_src>
import functools

import jax
import jax.numpy as jnp
from jax.experimental import pallas as pl
from jax.experimental.pallas import tpu as pltpu


# ------------------------------- utilities --------------------------------- #

def _ceil_to(x, m):
    return ((x + m - 1) // m) * m


def _pad3(x, d1, d2):
    """Zero-pad the last two dims of a (batch, d1, d2) array."""
    _, m, k = x.shape
    if m == d1 and k == d2:
        return x
    return jnp.pad(x, ((0, 0), (0, d1 - m), (0, d2 - k)))


# Tile-size caps: <=5 MiB of double-buffered VMEM at f32 -> safe on
# v5e/v6e/v7x scoped-VMEM budgets while keeping per-step overhead amortized.
_TM_MAX = 256
_TN_MAX = 512
_TK_MAX = 512


def _pick_tiles(M, K, N):
    tm = min(_TM_MAX, _ceil_to(M, 8))
    tn = min(_TN_MAX, _ceil_to(N, 128))
    tk = min(_TK_MAX, _ceil_to(K, 128))
    return tm, tn, tk


def _as_batched_3d(A, B):
    """Broadcast leading dims like torch `@` and flatten them to one batch."""
    if A.ndim == 2 and B.ndim == 2:
        return A[None], B[None], ()
    assert A.ndim >= 3 and B.ndim >= 3, "unsupported operand ranks for matmul"
    batch = jnp.broadcast_shapes(A.shape[:-2], B.shape[:-2])
    A = jnp.broadcast_to(A, batch + A.shape[-2:])
    B = jnp.broadcast_to(B, batch + B.shape[-2:])
    flat = 1
    for d in batch:
        flat *= d
    return (A.reshape((flat,) + A.shape[-2:]),
            B.reshape((flat,) + B.shape[-2:]),
            batch)


# ----------------------------- Pallas kernels ------------------------------ #

def _matmul_kernel(a_ref, b_ref, o_ref, acc_ref):
    # grid = (batch, i, j, k); k (reduction) is the trailing axis.
    @pl.when(pl.program_id(3) == 0)
    def _():
        acc_ref[...] = jnp.zeros_like(acc_ref)

    acc_ref[...] += jnp.dot(a_ref[...], b_ref[...],
                            preferred_element_type=jnp.float32)

    @pl.when(pl.program_id(3) == pl.num_programs(3) - 1)
    def _():
        o_ref[...] = acc_ref[...].astype(o_ref.dtype)


def _quant_matmul_kernel(scales_ref, a_ref, b_ref, o_ref, acc_ref,
                         *, a_qmax, b_qmax, use_bf16_codes):
    # scales_ref (SMEM, f32[3]) = [1/A_interval, 1/B_interval,
    #                              A_interval * B_interval]
    @pl.when(pl.program_id(3) == 0)
    def _():
        acc_ref[...] = jnp.zeros_like(acc_ref)

    inv_a = scales_ref[0]
    inv_b = scales_ref[1]

    # Integer codes only; the combined per-tensor scale is applied once at
    # the epilogue: (qa*sa) @ (qb*sb) == (qa @ qb) * (sa*sb).
    qa = jnp.clip(jnp.round(a_ref[...] * inv_a),
                  -float(a_qmax), float(a_qmax - 1))
    qb = jnp.clip(jnp.round(b_ref[...] * inv_b),
                  -float(b_qmax), float(b_qmax - 1))
    if use_bf16_codes:
        # Codes with |q| <= 256 are exactly representable in bf16: bit-exact
        # and hits the fast bf16 MXU path on v5e/v6e/v7x.
        qa = qa.astype(jnp.bfloat16)
        qb = qb.astype(jnp.bfloat16)

    acc_ref[...] += jnp.dot(qa, qb, preferred_element_type=jnp.float32)

    @pl.when(pl.program_id(3) == pl.num_programs(3) - 1)
    def _():
        o_ref[...] = (acc_ref[...] * scales_ref[2]).astype(o_ref.dtype)


# ------------------------------ host wrappers ------------------------------ #

_COMPILER_PARAMS = pltpu.CompilerParams(
    dimension_semantics=("parallel", "parallel", "parallel", "arbitrary"),
    vmem_limit_bytes=32 * 1024 * 1024,
)


def _tiled_call(kernel, A, B, extra_args=(), extra_specs=()):
    """Shared tiled pallas_call wrapper for raw and quantized matmul.

    A: (Bt, M, K), B: (Bt, K, N) -> (Bt, M, N)
    """
    Bt, M, K = A.shape
    _, _, N = B.shape
    tm, tn, tk = _pick_tiles(M, K, N)
    Mp, Kp, Np = _ceil_to(M, tm), _ceil_to(K, tk), _ceil_to(N, tn)

    Ap = _pad3(A, Mp, Kp)   # zero padding is exact for (quantized) matmul
    Bp = _pad3(B, Kp, Np)

    grid = (Bt, Mp // tm, Np // tn, Kp // tk)
    itemsize = jnp.dtype(A.dtype).itemsize
    cost = pl.CostEstimate(
        flops=2 * Bt * Mp * Np * Kp,
        transcendentals=0,
        bytes_accessed=(Ap.size + Bp.size + Bt * Mp * Np) * itemsize,
    )

    out = pl.pallas_call(
        kernel,
        out_shape=jax.ShapeDtypeStruct((Bt, Mp, Np), A.dtype),
        grid=grid,
        in_specs=list(extra_specs) + [
            pl.BlockSpec((pl.Squeezed(), tm, tk), lambda b, i, j, k: (b, i, k)),
            pl.BlockSpec((pl.Squeezed(), tk, tn), lambda b, i, j, k: (b, k, j)),
        ],
        out_specs=pl.BlockSpec((pl.Squeezed(), tm, tn),
                               lambda b, i, j, k: (b, i, j)),
        scratch_shapes=[pltpu.VMEM((tm, tn), jnp.float32)],
        compiler_params=_COMPILER_PARAMS,
        cost_estimate=cost,
    )(*extra_args, Ap, Bp)

    if (Mp, Np) != (M, N):
        out = out[:, :M, :N]
    return out


@jax.jit
def _raw_matmul_3d(A, B):
    return _tiled_call(_matmul_kernel, A, B)


@functools.partial(jax.jit, static_argnames=("a_qmax", "b_qmax"))
def _quant_matmul_3d(A, B, a_interval, b_interval, *, a_qmax, b_qmax):
    # Clamp intervals to avoid NaN/Inf from all-zero calibration inputs.
    eps = jnp.float32(1e-8)
    a_int = jnp.maximum(jnp.asarray(a_interval, jnp.float32), eps)
    b_int = jnp.maximum(jnp.asarray(b_interval, jnp.float32), eps)
    scales = jnp.stack([1.0 / a_int, 1.0 / b_int, a_int * b_int])  # f32[3]

    use_bf16_codes = (a_qmax <= 256) and (b_qmax <= 256)
    kernel = functools.partial(_quant_matmul_kernel,
                               a_qmax=a_qmax, b_qmax=b_qmax,
                               use_bf16_codes=use_bf16_codes)
    smem_spec = pl.BlockSpec(memory_space=pltpu.MemorySpace.SMEM)
    return _tiled_call(kernel, A, B,
                       extra_args=(scales,), extra_specs=(smem_spec,))


def _pallas_raw_matmul(A, B):
    A3, B3, batch = _as_batched_3d(A, B)
    out = _raw_matmul_3d(A3, B3)
    return out.reshape(batch + out.shape[-2:]) if batch else out[0]


def _pallas_quant_matmul(A, B, A_interval, B_interval, A_qmax, B_qmax):
    A3, B3, batch = _as_batched_3d(A, B)
    out = _quant_matmul_3d(A3, B3, A_interval, B_interval,
                           a_qmax=A_qmax, b_qmax=B_qmax)
    return out.reshape(batch + out.shape[-2:]) if batch else out[0]


# --------------------------------- module ---------------------------------- #

class MinMaxQuantMatMul:
    """JAX/Pallas port of the PyTorch MinMaxQuantMatMul module."""

    def __init__(self, A_bit=8, B_bit=8, mode='raw'):
        self.A_bit = A_bit
        self.B_bit = B_bit
        self.A_interval = None
        self.B_interval = None
        self.A_qmax = 2 ** (self.A_bit - 1)
        self.B_qmax = 2 ** (self.B_bit - 1)
        self.mode = mode
        self.raw_input = None
        self.raw_out = None
        self.calibrated = None

    def __call__(self, A, B):
        if self.mode == 'raw':
            out = _pallas_raw_matmul(A, B)
        elif self.mode == 'quant_forward':
            out = self.quant_forward(A, B)
        elif self.mode == 'calibration_step1':
            out = self.calibration_step1(A, B)
        elif self.mode == 'calibration_step2':
            out = self.calibration_step2(A, B)
        else:
            raise NotImplementedError
        return out

    def quant_forward(self, A, B):
        assert self.calibrated is not None, (
            'You should run calibrate_forward before run quant_forward')
        return _pallas_quant_matmul(A, B, self.A_interval, self.B_interval,
                                    self.A_qmax, self.B_qmax)

    def calibration_step1(self, A, B):
        self.raw_input = (A, B)
        out = _pallas_raw_matmul(A, B)
        self.raw_out = out
        return out

    def calibration_step2(self, A, B):
        # Standard min-max calibration: interval = abs(x).max() / (qmax - 0.5)
        eps = jnp.float32(1e-8)
        self.A_interval = jnp.maximum(
            jnp.max(jnp.abs(A)).astype(jnp.float32) / (self.A_qmax - 0.5), eps)
        self.B_interval = jnp.maximum(
            jnp.max(jnp.abs(B)).astype(jnp.float32) / (self.B_qmax - 0.5), eps)
        self.calibrated = True
        return _pallas_quant_matmul(A, B, self.A_interval, self.B_interval,
                                    self.A_qmax, self.B_qmax)


# ---------------------------------- main ----------------------------------- #

if __name__ == "__main__":
    key = jax.random.PRNGKey(0)
    k_a, k_b = jax.random.split(key)

    batch, M, K, N = 2, 8, 32, 8
    A = jax.random.normal(k_a, (batch, M, K), dtype=jnp.float32)
    B = jax.random.normal(k_b, (batch, K, N), dtype=jnp.float32)

    mod = MinMaxQuantMatMul(A_bit=8, B_bit=8, mode='raw')

    # raw mode: A @ B via tiled Pallas kernel
    out_raw = jax.block_until_ready(mod(A, B))
    ref_raw = jnp.einsum('bmk,bkn->bmn', A, B)
    assert out_raw.shape == ref_raw.shape
    assert jnp.allclose(out_raw, ref_raw, atol=1e-4, rtol=1e-4)

    # calibration_step1: stash raw tensors, still raw matmul
    mod.mode = 'calibration_step1'
    out_c1 = jax.block_until_ready(mod(A, B))
    assert jnp.allclose(out_c1, ref_raw, atol=1e-4, rtol=1e-4)

    # calibration_step2: sets intervals, returns quantized matmul
    mod.mode = 'calibration_step2'
    _ = jax.block_until_ready(mod(A, B))

    # quant_forward via fused quantize + bf16-code matmul kernel
    mod.mode = 'quant_forward'
    out_q = jax.block_until_ready(mod(A, B))

    # reference quantized matmul in plain JAX (same reciprocal formulation)
    def qref(x, interval, qmax):
        inv = 1.0 / interval
        return jnp.clip(jnp.round(x * inv), -qmax, qmax - 1) * interval

    ref_q = jnp.einsum('bmk,bkn->bmn',
                       qref(A, mod.A_interval, mod.A_qmax),
                       qref(B, mod.B_interval, mod.B_qmax))
    assert jnp.allclose(out_q, ref_q, atol=1e-3, rtol=1e-3)

    print("KERNEL_OK")
</pallas_src>

<mosaic_0001>
module attributes {stable_mosaic.version = 11 : i64} {
  func.func @_matmul_kernel(%arg0: i32, %arg1: i32, %arg2: i32, %arg3: i32, %arg4: memref<1x8x128xf32, #tpu.memory_space<vmem>>, %arg5: memref<1x128x128xf32, #tpu.memory_space<vmem>>, %arg6: memref<1x8x128xf32, #tpu.memory_space<vmem>>, %arg7: memref<8x128xf32, #tpu.memory_space<vmem>>) attributes {dimension_semantics = [#tpu.dimension_semantics<parallel>, #tpu.dimension_semantics<parallel>, #tpu.dimension_semantics<parallel>, #tpu.dimension_semantics<arbitrary>], iteration_bounds = array<i64: 2, 1, 1, 1>, scalar_prefetch = 0 : i64, scratch_operands = 1 : i64, tpu.core_type = #tpu.core_type<tc>, window_params = [{transform_indices = @transform_0, window_bounds = array<i64: 1, 8, 128>}, {transform_indices = @transform_1, window_bounds = array<i64: 1, 128, 128>}, {transform_indices = @transform_2, window_bounds = array<i64: 1, 8, 128>}]} {
    %c0_i32 = arith.constant 0 : i32
    %0 = arith.cmpi eq, %arg3, %c0_i32 : i32
    %1 = arith.extui %0 : i1 to i32
    %c0_i32_0 = arith.constant 0 : i32
    %2 = arith.cmpi ne, %1, %c0_i32_0 : i32
    scf.if %2 {
      %cst_12 = arith.constant 0.000000e+00 : f32
      %14 = vector.broadcast %cst_12 : f32 to vector<8x128xf32>
      %c0_13 = arith.constant 0 : index
      %c0_14 = arith.constant 0 : index
      %15 = vector.load %arg7[%c0_13, %c0_14] : memref<8x128xf32, #tpu.memory_space<vmem>>, vector<8x128xf32>
      tpu.vector_store %arg7[%c0_13, %c0_14], %14 {strides = array<i32>} : memref<8x128xf32, #tpu.memory_space<vmem>>, vector<8x128xf32>,
    } else {
    }
    %c0 = arith.constant 0 : index
    %c0_1 = arith.constant 0 : index
    %3 = vector.load %arg7[%c0, %c0_1] : memref<8x128xf32, #tpu.memory_space<vmem>>, vector<8x128xf32>
    %c0_2 = arith.constant 0 : index
    %c0_3 = arith.constant 0 : index
    %c0_4 = arith.constant 0 : index
    %4 = vector.load %arg4[%c0_2, %c0_3, %c0_4] : memref<1x8x128xf32, #tpu.memory_space<vmem>>, vector<1x8x128xf32>
    %5 = vector.shape_cast %4 : vector<1x8x128xf32> to vector<8x128xf32>
    %c0_5 = arith.constant 0 : index
    %c0_6 = arith.constant 0 : index
    %c0_7 = arith.constant 0 : index
    %6 = vector.load %arg5[%c0_5, %c0_6, %c0_7] : memref<1x128x128xf32, #tpu.memory_space<vmem>>, vector<1x128x128xf32>
    %7 = vector.shape_cast %6 : vector<1x128x128xf32> to vector<128x128xf32>
    %cst = arith.constant dense<0.000000e+00> : vector<8x128xf32>
    %8 = tpu.matmul %5, %7, %cst {dimension_numbers = #tpu.dot_dimension_numbers<[1], [0], [0], [1], [0, 0, 1, 1], [], []>} : vector<8x128xf32>, vector<128x128xf32>, vector<8x128xf32> -> vector<8x128xf32>
    %9 = arith.addf %3, %8 : vector<8x128xf32>
    %c0_8 = arith.constant 0 : index
    %c0_9 = arith.constant 0 : index
    %10 = vector.load %arg7[%c0_8, %c0_9] : memref<8x128xf32, #tpu.memory_space<vmem>>, vector<8x128xf32>
    tpu.vector_store %arg7[%c0_8, %c0_9], %9 {strides = array<i32>} : memref<8x128xf32, #tpu.memory_space<vmem>>, vector<8x128xf32>,
    %c0_i32_10 = arith.constant 0 : i32
    %11 = arith.cmpi eq, %arg3, %c0_i32_10 : i32
    %12 = arith.extui %11 : i1 to i32
    %c0_i32_11 = arith.constant 0 : i32
    %13 = arith.cmpi ne, %12, %c0_i32_11 : i32
    scf.if %13 {
      %c0_12 = arith.constant 0 : index
      %c0_13 = arith.constant 0 : index
      %14 = vector.load %arg7[%c0_12, %c0_13] : memref<8x128xf32, #tpu.memory_space<vmem>>, vector<8x128xf32>
      %c0_14 = arith.constant 0 : index
      %c0_15 = arith.constant 0 : index
      %c0_16 = arith.constant 0 : index
      %15 = vector.load %arg6[%c0_14, %c0_15, %c0_16] : memref<1x8x128xf32, #tpu.memory_space<vmem>>, vector<1x8x128xf32>
      %16 = vector.shape_cast %15 : vector<1x8x128xf32> to vector<8x128xf32>
      %17 = vector.shape_cast %14 : vector<8x128xf32> to vector<1x8x128xf32>
      tpu.vector_store %arg6[%c0_14, %c0_15, %c0_16], %17 {strides = array<i32>} : memref<1x8x128xf32, #tpu.memory_space<vmem>>, vector<1x8x128xf32>,
    } else {
    }
    return
  }
  func.func @transform_0(%arg0: i32, %arg1: i32, %arg2: i32, %arg3: i32) -> (i32, i32, i32) {
    %c0_i32 = arith.constant 0 : i32
    return %arg0, %arg1, %arg3 : i32, i32, i32
  }
  func.func @transform_1(%arg0: i32, %arg1: i32, %arg2: i32, %arg3: i32) -> (i32, i32, i32) {
    %c0_i32 = arith.constant 0 : i32
    return %arg0, %arg3, %arg2 : i32, i32, i32
  }
  func.func @transform_2(%arg0: i32, %arg1: i32, %arg2: i32, %arg3: i32) -> (i32, i32, i32) {
    %c0_i32 = arith.constant 0 : i32
    return %arg0, %arg1, %arg2 : i32, i32, i32
  }
}

</mosaic_0001>

<bundles_post_ra>
// kernel: _raw_matmul_3d.1
= control target key start
LH: loop header
LB: loop body
LE: loop exit
PB: predicated region body
PF: predicated region fallthrough
CT: control target
= control target key end

     0   :  { %7 = vsyncpa [#allocation4], 0  ;;  %s840_s0 = inlined_call_operand.vmem [shape: f32[2,8,128], index: 0, kind: input, shape index: {}]   ;;  %s841_s1 = inlined_call_operand.vmem [shape: f32[2,128,128], index: 1, kind: input, shape index: {}]   ;;  %s842_s2 = inlined_call_operand.hbm [shape: f32[2,8,128], index: 2, kind: output, shape index: {}]  }
   0x1   :  { %9 = vsyncpa [#allocation4 + $0x1], 0  ;;  %s703_s9 = smov 0   ;;  %s705_s10 = smov 0  }
   0x2   :  { %s707_s11 = smov 0   ;;  %s709_s12 = smov 0  }
   0x3   :  { %s711_s13 = smov 0   ;;  %s713_s14 = smov 0  }
   0x4 LB: > { %s456_s15 = sadd.s32 4294967295, %s682_s14   ;;  %s457_s16 = sadd.s32 4294967294, %s682_s14   ;;  %s682_s14 = sphi %s713_s14, %s15_s14   ;;  %s678_s13 = sphi %s711_s13, %s849_s13   ;;  %s674_s12 = sphi %s709_s12, %s848_s12   ;;  %s670_s11 = sphi %s707_s11, %s847_s11   ;;  %s666_s10 = sphi %s705_s10, %s846_s10   ;;  %s662_s9 = sphi %s703_s9, %s845_s9  }
   0x5   : > { %s41_s17 = sadd.s32 1, %s678_s13  ;;  %s112_s18 = sadd.s32 1, %s670_s11 }
   0x6   : > { %p43_p0 = scmp.ge.s32.totalorder %s41_s17, 2  ;;  %p122_p1 = scmp.ne.s32.totalorder %s670_s11, %s666_s10 }
   0x7   : > { %p123_p2 = scmp.eq.s32.totalorder %s456_s15, 1  ;;  %p128_p3 = scmp.ne.s32.totalorder %s666_s10, %s662_s9 }
   0x8   : > { %s851_s17 = smov (%p43_p0, %s41_s17), 0  ;;  %p129_p5 = scmp.eq.s32.totalorder %s457_s16, 1 }
   0x9   : > { %p743_p4 = por %p123_p2, %p122_p1  ;;  %s105_s20 = ssub.s32 %s678_s13, %s851_s17 }
   0xa   : > { %p460_p6 = scmp.ge.s32.totalorder %s682_s14, 1  ;;  %p110_p7 = scmp.eq.s32.totalorder %s105_s20, 0 }
   0xb   : > { %p750_p8 = por %p129_p5, %p128_p3  ;;  %p176_p9 = scmp.lt.s32.totalorder %s682_s14, 3 }
   0xc   : > { %s756_s22 = scalar_select %p110_p7, %s670_s11, %s112_s18  }
   0xd   : > { %p177_p10 = pnand %p460_p6, %p176_p9 }
   0xe   : > { %p215_p11 = scmp.lt.s32.totalorder (!%p177_p10), %s674_s12, 1  ;;  %v684_v0 = vmov (!%p177_p10), 0.0|0.0   ;;  %vm685_vm0 = vmmov (!%p177_p10), 0   ;;  %v686_v1 = vmov (!%p177_p10), 0.0   ;;  %s212_s4 = sand.u32 (!%p177_p10), 1, %s666_s10  }
   0xf   : > { %180 = sbr.rel (%p177_p10) target bundleno = 286 (0x11e), region = 28  ;;  %522 = vmatprep.subr.bf16.mxu0 (!%p177_p10), %v684_v0  ;;  %519 = vmatprep.mubr.msk.f32.mxu0 (!%p177_p10), %vm685_vm0, %v686_v1  ;;  %s461_s5 = sshll.u32 (!%p177_p10), %s212_s4, 3 }
  0x10   : > { %s214_s6 = scalar_lea.vmem (!%p177_p10), [#allocation3], %s461_s5  ;;  %s466_s8 = sshll.u32 (!%p177_p10), %s674_s12, 7 }
  0x11   : > { %s354_s7 = sshll.u32 (!%p177_p10), %s214_s6, 4  ;;  %s795_s18 = scalar_lea.hbm (!%p177_p10), %s842_s2, %s466_s8  ;;  %s790_s7 = int_to_ptr.vmem [resolvable:$true] %s354_s7 }
  0x12   : > { %s339_s20 = scalar_lea.sflag (!%p177_p10), [#allocation4], %s212_s4 }
  0x16   : > { %s760_s23 = scalar_select %p215_p11, %s674_s12, 1 }
  0x17   : > { %s687_s12 = smov [#allocation3]  }
  0x18   : > { %s469_s24 = sshll.u32 %s760_s23, 7  ;;  %s462_s28 = sshll.u32 %s760_s23, 3 }
  0x19   : > { %s766_s27 = scalar_lea.vmem %s841_s1, %s469_s24  ;;  %s224_s3 = scalar_lea.vmem %s840_s0, %s462_s28 }
  0x1a   : > { %v245_v2 = vld [vmem:[%s766_s27] sm:$0xff]  ;;  %v246_v3 = vld [vmem:[%s766_s27 + $0x8] sm:$0xff]  ;;  %v247_v4 = vld [vmem:[%s766_s27 + $0x10] sm:$0xff]  ;;  %s604_s23 = scalar_lea.vmem %s790_s7, 128  ;;  %s608_s24 = sshll.u32 %s687_s12, 4  ;;  %s609_s24 = int_to_ptr.vmem [resolvable:$false] %s608_s24 }
  0x1b   : > { %v523_v5 = vpack.c.bf16 %v246_v3, %v245_v2  ;;  %v248_v6 = vld [vmem:[%s766_s27 + $0x18] sm:$0xff]  ;;  %v249_v8 = vld [vmem:[%s766_s27 + $0x20] sm:$0xff]  ;;  %v250_v9 = vld [vmem:[%s766_s27 + $0x28] sm:$0xff]  ;;  %p605_p12 = scmp.ne.s32.totalorder %s790_s7, %s604_s23  ;;  %s610_s25 = scalar_lea.vmem %s609_s24, 256 }
  0x1c   : > { %v526_v7 = vpack.c.bf16 %v248_v6, %v247_v4  ;;  %v529_v10 = vpack.c.bf16 %v250_v9, %v249_v8  ;;  %v251_v11 = vld [vmem:[%s766_s27 + $0x30] sm:$0xff]  ;;  %v252_v12 = vld [vmem:[%s766_s27 + $0x38] sm:$0xff]  ;;  %v253_v14 = vld [vmem:[%s766_s27 + $0x40] sm:$0xff]  ;;  %p611_p1 = scmp.lt.s32.totalorder %s790_s7, %s609_s24  ;;  %p612_p2 = scmp.lt.s32.totalorder %s610_s25, %s604_s23 }
  0x1d   : > { %524 = vmatpush3.bf16.msra.mxu0 %v523_v5  ;;  %v532_v13 = vpack.c.bf16 %v252_v12, %v251_v11  ;;  %v254_v15 = vld [vmem:[%s766_s27 + $0x48] sm:$0xff]  ;;  %v255_v17 = vld [vmem:[%s766_s27 + $0x50] sm:$0xff]  ;;  %v256_v18 = vld [vmem:[%s766_s27 + $0x58] sm:$0xff]  ;;  %p606_p13 = pnand %p605_p12, %p743_p4 }
  0x1e   : > { %525 = vmatprep.subr.bf16.mxu0 %v684_v0  ;;  %v535_v16 = vpack.c.bf16 %v254_v15, %v253_v14  ;;  %v538_v19 = vpack.c.bf16 %v256_v18, %v255_v17  ;;  %v257_v20 = vld [vmem:[%s766_s27 + $0x60] sm:$0xff]  ;;  %v258_v21 = vld [vmem:[%s766_s27 + $0x68] sm:$0xff]  ;;  %v259_v23 = vld [vmem:[%s766_s27 + $0x70] sm:$0xff]  ;;  %p613_p3 = por %p612_p2, %p611_p1 }
  0x1f   : > { %v541_v22 = vpack.c.bf16 %v258_v21, %v257_v20  ;;  %v260_v24 = vld [vmem:[%s766_s27 + $0x78] sm:$0xff]  ;;  %v244_v26 = vld [vmem:[%s224_s3] sm:$0xff]  ;;  %p607_p0 = pneg %p606_p13 }
  0x20   : > { %v544_v25 = vpack.c.bf16 %v260_v24, %v259_v23 }
  0x21   : > { %527 = vmatpush3.bf16.msra.mxu0 %v526_v7  ;;  %p614_p5 = pnand %p613_p3, %p607_p0 }
  0x22   : > { %528 = vmatprep.subr.bf16.mxu0 %v684_v0 }
  0x25   : > { %530 = vmatpush3.bf16.msra.mxu0 %v529_v10 }
  0x26   : > { %531 = vmatprep.subr.bf16.mxu0 %v684_v0 }
  0x29   : > { %533 = vmatpush3.bf16.msra.mxu0 %v532_v13 }
  0x2a   : > { %534 = vmatprep.subr.bf16.mxu0 %v684_v0 }
  0x2d   : > { %536 = vmatpush3.bf16.msra.mxu0 %v535_v16 }
  0x2e   : > { %537 = vmatprep.subr.bf16.mxu0 %v684_v0 }
  0x31   : > { %539 = vmatpush3.bf16.msra.mxu0 %v538_v19 }
  0x32   : > { %540 = vmatprep.subr.bf16.mxu0 %v684_v0 }
  0x35   : > { %542 = vmatpush3.bf16.msra.mxu0 %v541_v22 }
  0x36   : > { %543 = vmatprep.subr.bf16.mxu0 %v684_v0 }
  0x39   : > { %545 = vmatpush3.bf16.msra.mxu0 %v544_v25 }
  0x3c   : > { %520 = vmatmul.mubr.f32.vlgmr.msra.gmra.mrb[0].mxu0 %v244_v26 }
 0x10f   : > { %v327_v27 = vpop.f32.mrb[0].mxu0 }
 0x110   : > { %337 = vst [vmem:[%s214_s6] sm:$0xff] %v327_v27  ;;  %v521_v28 = vpop.f32.mrb[1].mxu0 }
 0x111   : > { %617 = shalt.err (!%p614_p5)
}
 0x112   : > { %s618_s26 = scalar_lea.hbm %s795_s18, 128  ;;  %s622_s29 = scalar_lea.hbm %s842_s2, 256 }
 0x113   : > { %p619_p6 = scmp.ne.s32.totalorder %s795_s18, %s618_s26  ;;  %p623_p10 = scmp.lt.u32.totalorder %s795_s18, %s842_s2 }
 0x114   : > { %p624_p11 = scmp.lt.u32.totalorder %s622_s29, %s618_s26  ;;  %p626_p13 = scmp.lt.u32.totalorder %s618_s26, %s795_s18 }
 0x115   : > { %p620_p7 = pnand %p619_p6, %p743_p4 }
 0x116   : > { %p625_p12 = por %p624_p11, %p623_p10 }
 0x117   : > { %p621_p9 = pneg %p620_p7 }
 0x118   : > { %p627_p0 = por %p626_p13, %p625_p12 }
 0x11a   : > { %p628_p1 = pnand %p627_p0, %p621_p9 }
 0x11c   : > { %631 = shalt.err (!%p628_p1)
}
 0x11d   : > { %546 = dma.vmem_to_hbm [thread:$0]  (%p743_p4), %s790_s7, 128, %s795_s18, %s339_s20  }
 0x11e PF: > { %p552_p2 = scmp.ge.s32.totalorder %s682_s14, 2  ;;  %s366_s4 = sand.u32 1, %s662_s9  }
 0x11f   : > { %s367_s5 = scalar_lea.sflag [#allocation4], %s366_s4 }
 0x120   : > { %p549_p3 = pnand %p552_p2, %p750_p8 }
 0x122   : > { %657 = dma.done.wait (!%p549_p3), %s367_s5, 128  }
 0x123   : > { %659 = vsyncadd (!%p549_p3), %s367_s5, 4294967168  ;;  %s15_s14 = sadd.s32 1, %s682_s14   ;;  %s845_s9 = smov %s666_s10 }
 0x124   : > { %p12_p5 = scmp.ge.s32.totalorder %s15_s14, 4   ;;  %s846_s10 = smov %s670_s11 }
 0x125   : > { %s847_s11 = smov %s756_s22  ;;  %s848_s12 = smov %s678_s13 }
 0x126   : > { %s849_s13 = smov %s851_s17  ;;  %14 = sbr.rel (!%p12_p5) target bundleno = 4 (0x4), region = 74 }
 0x12d   :  { %372 = vsyncpa [#allocation4], 1 }
 0x12e   :  { %374 = vsyncpa [#allocation4 + $0x1], 1 }

</bundles_post_ra>
